<compile_context>
chip_gen: v7x
topology: tpu7x:2x2x1
jax: 0.10.0
libtpu: 0.0.40
codegen_flags: <defaults>
</compile_context>

<pallas_src>
import jax
import jax.numpy as jnp
from jax import lax
from jax.experimental import pallas as pl
from jax.experimental.pallas import tpu as pltpu

EPS = 1e-5


def _adailn_kernel(x_ref, rho0_ref, rho1_ref, gamma_ref, beta_ref, o_ref):
    """One grid step normalizes Nb images.

    x_ref/o_ref:          (Nb, C, HW)
    rho0_ref, rho1_ref:   (C, 1)      softmax(rho) weights, shared over batch
    gamma_ref, beta_ref:  (Nb, C, 1)  per-sample, per-channel affine
    """
    x = x_ref[...]
    xf = x.astype(jnp.float32)
    Nb, C, HW = xf.shape

    # --- Instance-norm partials (one reduction pass over HW, centered) ------
    in_mean = jnp.sum(xf, axis=2, keepdims=True) * (1.0 / HW)         # (Nb,C,1)
    diff = xf - in_mean
    css = jnp.sum(diff * diff, axis=2, keepdims=True)                 # Σ(x-μ_c)²
    in_var = css * (1.0 / (HW - 1))                                   # unbiased

    # --- Layer-norm stats from the per-channel partials (exact identity) ----
    ln_mean = jnp.mean(in_mean, axis=1, keepdims=True)                # (Nb,1,1)
    dm = in_mean - ln_mean
    ln_sumsq = jnp.sum(css + HW * (dm * dm), axis=1, keepdims=True)   # (Nb,1,1)
    ln_var = ln_sumsq * (1.0 / (C * HW - 1))                          # unbiased

    # --- Fold everything into a per-channel scale/bias (rsqrt on stats) -----
    inv_in = lax.rsqrt(in_var + EPS)                                  # (Nb,C,1)
    inv_ln = lax.rsqrt(ln_var + EPS)                                  # (Nb,1,1)
    rho0 = rho0_ref[...][None]                                        # (1,C,1)
    rho1 = rho1_ref[...][None]                                        # (1,C,1)
    gamma = gamma_ref[...]                                            # (Nb,C,1)
    beta = beta_ref[...]                                              # (Nb,C,1)

    scale = gamma * (rho0 * inv_in + rho1 * inv_ln)                   # (Nb,C,1)
    bias = beta - gamma * (rho0 * in_mean * inv_in + rho1 * ln_mean * inv_ln)

    # --- Single FMA apply pass over the full block ---------------------------
    o_ref[...] = (xf * scale + bias).astype(o_ref.dtype)


def adailn_forward(x_nchw, rho, gamma, beta, *, target_block_bytes=4 << 20):
    """x_nchw: (N, C, H, W); rho: (1, C, 2); gamma, beta: (N, C)."""
    N, C, H, W = x_nchw.shape
    HW = H * W
    x = x_nchw.reshape(N, C, HW)

    # Parameter glue in plain JAX: softmax over the last axis of rho.
    rho_sm = jax.nn.softmax(rho.astype(jnp.float32), axis=2)          # (1, C, 2)
    rho0 = rho_sm[0, :, 0].reshape(C, 1)
    rho1 = rho_sm[0, :, 1].reshape(C, 1)

    gamma3 = gamma.astype(jnp.float32).reshape(N, C, 1)
    beta3 = beta.astype(jnp.float32).reshape(N, C, 1)

    # Block several images per grid step: target a few MiB per input block to
    # amortize per-step overhead while staying well inside v7x's 64 MiB VMEM.
    per_image_f32 = C * HW * 4
    nb = 1
    for cand in range(N, 0, -1):
        if N % cand == 0 and cand * per_image_f32 <= target_block_bytes:
            nb = cand
            break
    grid_n = N // nb

    # VMEM budget: in + out (double-buffered, input dtype) + f32 intermediates.
    itemsize = jnp.dtype(x.dtype).itemsize
    block_bytes = nb * C * HW * itemsize
    vmem_limit = int(min(100 * 1024 * 1024,
                         max(32 * 1024 * 1024,
                             4 * block_bytes + 4 * nb * C * HW * 4)))

    # TODO(synk): for per-image C*HW blocks too large for VMEM, switch to a
    # two-phase HW-tiled pipeline (stats accumulation pass + apply pass).
    out = pl.pallas_call(
        _adailn_kernel,
        out_shape=jax.ShapeDtypeStruct((N, C, HW), x.dtype),
        grid_spec=pltpu.PrefetchScalarGridSpec(
            num_scalar_prefetch=0,
            grid=(grid_n,),
            in_specs=[
                pl.BlockSpec((nb, C, HW), lambda n: (n, 0, 0)),
                pl.BlockSpec((C, 1), lambda n: (0, 0)),
                pl.BlockSpec((C, 1), lambda n: (0, 0)),
                pl.BlockSpec((nb, C, 1), lambda n: (n, 0, 0)),
                pl.BlockSpec((nb, C, 1), lambda n: (n, 0, 0)),
            ],
            out_specs=pl.BlockSpec((nb, C, HW), lambda n: (n, 0, 0)),
        ),
        compiler_params=pltpu.CompilerParams(
            dimension_semantics=("parallel",),
            vmem_limit_bytes=vmem_limit,
        ),
    )(x, rho0, rho1, gamma3, beta3)

    return out.reshape(N, C, H, W)


def adailn_reference(x, rho, gamma, beta):
    """Pure-JAX reference mirroring the PyTorch forward (using_bn=False)."""
    N, C, H, W = x.shape
    xf = x.astype(jnp.float32)
    in_mean = jnp.mean(xf, axis=(2, 3), keepdims=True)
    in_var = jnp.sum((xf - in_mean) ** 2, axis=(2, 3), keepdims=True) / (H * W - 1)
    out_in = (xf - in_mean) / jnp.sqrt(in_var + EPS)
    ln_mean = jnp.mean(xf, axis=(1, 2, 3), keepdims=True)
    ln_var = jnp.sum((xf - ln_mean) ** 2, axis=(1, 2, 3), keepdims=True) / (C * H * W - 1)
    out_ln = (xf - ln_mean) / jnp.sqrt(ln_var + EPS)
    rho_sm = jax.nn.softmax(rho.astype(jnp.float32), axis=2)
    rho0 = rho_sm[:, :, 0].reshape(1, C, 1, 1)
    rho1 = rho_sm[:, :, 1].reshape(1, C, 1, 1)
    out = rho0 * out_in + rho1 * out_ln
    return out * gamma.reshape(N, C, 1, 1) + beta.reshape(N, C, 1, 1)


if __name__ == "__main__":
    # Shapes consistent with the module's forward: NCHW input, per-sample
    # per-channel gamma/beta.
    N, C, H, W = 2, 4, 16, 16

    key = jax.random.PRNGKey(0)
    kx, kg, kb = jax.random.split(key, 3)
    x = jax.random.normal(kx, (N, C, H, W), dtype=jnp.float32)
    gamma = jax.random.normal(kg, (N, C), dtype=jnp.float32)
    beta = jax.random.normal(kb, (N, C), dtype=jnp.float32)

    # Deterministic parameter init matching adaILN.__init__ (using_bn=False):
    # rho[:, :, 0] = 3.2, rho[:, :, 1] = 1.0
    rho = jnp.concatenate(
        [jnp.full((1, C, 1), 3.2, dtype=jnp.float32),
         jnp.full((1, C, 1), 1.0, dtype=jnp.float32)],
        axis=2,
    )

    out = adailn_forward(x, rho, gamma, beta)
    out = jax.block_until_ready(out)

    ref = adailn_reference(x, rho, gamma, beta)
    assert out.shape == (N, C, H, W)
    assert jnp.allclose(out, ref, atol=1e-4, rtol=1e-4), "mismatch vs reference"

    print("KERNEL_OK")
</pallas_src>

<mosaic_0001>
module attributes {stable_mosaic.version = 11 : i64} {
  func.func @_adailn_kernel(%arg0: i32, %arg1: memref<2x4x256xf32, #tpu.memory_space<vmem>>, %arg2: memref<4x1xf32, #tpu.memory_space<vmem>>, %arg3: memref<4x1xf32, #tpu.memory_space<vmem>>, %arg4: memref<2x4x1xf32, #tpu.memory_space<vmem>>, %arg5: memref<2x4x1xf32, #tpu.memory_space<vmem>>, %arg6: memref<2x4x256xf32, #tpu.memory_space<vmem>>) attributes {dimension_semantics = [#tpu.dimension_semantics<parallel>], iteration_bounds = array<i64: 1>, scalar_prefetch = 0 : i64, scratch_operands = 0 : i64, tpu.core_type = #tpu.core_type<tc>, window_params = [{transform_indices = @transform_0, window_bounds = array<i64: 2, 4, 256>}, {pipeline_mode = #tpu.pipeline_mode<synchronous>, transform_indices = @transform_1, window_bounds = array<i64: 4, 1>}, {pipeline_mode = #tpu.pipeline_mode<synchronous>, transform_indices = @transform_2, window_bounds = array<i64: 4, 1>}, {transform_indices = @transform_3, window_bounds = array<i64: 2, 4, 1>}, {transform_indices = @transform_4, window_bounds = array<i64: 2, 4, 1>}, {transform_indices = @transform_5, window_bounds = array<i64: 2, 4, 256>}]} {
    %c0 = arith.constant 0 : index
    %c0_0 = arith.constant 0 : index
    %c0_1 = arith.constant 0 : index
    %0 = vector.load %arg1[%c0, %c0_0, %c0_1] : memref<2x4x256xf32, #tpu.memory_space<vmem>>, vector<2x4x256xf32>
    %cst = arith.constant dense<0.000000e+00> : vector<2x4xf32>
    %1 = vector.multi_reduction <add>, %0, %cst [2] : vector<2x4x256xf32> to vector<2x4xf32>
    %2 = vector.shape_cast %1 : vector<2x4xf32> to vector<2x4x1xf32>
    %cst_2 = arith.constant 3.906250e-03 : f32
    %3 = vector.broadcast %cst_2 : f32 to vector<2x4x1xf32>
    %4 = arith.mulf %2, %3 : vector<2x4x1xf32>
    %5 = vector.broadcast %4 : vector<2x4x1xf32> to vector<2x4x256xf32>
    %6 = arith.subf %0, %5 : vector<2x4x256xf32>
    %7 = arith.mulf %6, %6 : vector<2x4x256xf32>
    %cst_3 = arith.constant dense<0.000000e+00> : vector<2x4xf32>
    %8 = vector.multi_reduction <add>, %7, %cst_3 [2] : vector<2x4x256xf32> to vector<2x4xf32>
    %9 = vector.shape_cast %8 : vector<2x4xf32> to vector<2x4x1xf32>
    %cst_4 = arith.constant 0.00392156886 : f32
    %10 = vector.broadcast %cst_4 : f32 to vector<2x4x1xf32>
    %11 = arith.mulf %9, %10 : vector<2x4x1xf32>
    %cst_5 = arith.constant dense<0.000000e+00> : vector<2x1xf32>
    %12 = vector.multi_reduction <add>, %4, %cst_5 [1] : vector<2x4x1xf32> to vector<2x1xf32>
    %13 = vector.shape_cast %12 : vector<2x1xf32> to vector<2x1x1xf32>
    %cst_6 = arith.constant 4.000000e+00 : f32
    %14 = vector.broadcast %cst_6 : f32 to vector<2x1x1xf32>
    %15 = arith.divf %13, %14 : vector<2x1x1xf32>
    %16 = vector.broadcast %15 : vector<2x1x1xf32> to vector<2x4x1xf32>
    %17 = arith.subf %4, %16 : vector<2x4x1xf32>
    %18 = arith.mulf %17, %17 : vector<2x4x1xf32>
    %cst_7 = arith.constant 2.560000e+02 : f32
    %19 = vector.broadcast %cst_7 : f32 to vector<2x4x1xf32>
    %20 = arith.mulf %19, %18 : vector<2x4x1xf32>
    %21 = arith.addf %9, %20 : vector<2x4x1xf32>
    %cst_8 = arith.constant dense<0.000000e+00> : vector<2x1xf32>
    %22 = vector.multi_reduction <add>, %21, %cst_8 [1] : vector<2x4x1xf32> to vector<2x1xf32>
    %23 = vector.shape_cast %22 : vector<2x1xf32> to vector<2x1x1xf32>
    %cst_9 = arith.constant 9.77517105E-4 : f32
    %24 = vector.broadcast %cst_9 : f32 to vector<2x1x1xf32>
    %25 = arith.mulf %23, %24 : vector<2x1x1xf32>
    %cst_10 = arith.constant 9.99999974E-6 : f32
    %26 = vector.broadcast %cst_10 : f32 to vector<2x4x1xf32>
    %27 = arith.addf %11, %26 : vector<2x4x1xf32>
    %28 = math.rsqrt %27 : vector<2x4x1xf32>
    %cst_11 = arith.constant 9.99999974E-6 : f32
    %29 = vector.broadcast %cst_11 : f32 to vector<2x1x1xf32>
    %30 = arith.addf %25, %29 : vector<2x1x1xf32>
    %31 = math.rsqrt %30 : vector<2x1x1xf32>
    %c0_12 = arith.constant 0 : index
    %c0_13 = arith.constant 0 : index
    %32 = vector.load %arg2[%c0_12, %c0_13] : memref<4x1xf32, #tpu.memory_space<vmem>>, vector<4x1xf32>
    %33 = vector.shape_cast %32 : vector<4x1xf32> to vector<1x4x1xf32>
    %c0_14 = arith.constant 0 : index
    %c0_15 = arith.constant 0 : index
    %34 = vector.load %arg3[%c0_14, %c0_15] : memref<4x1xf32, #tpu.memory_space<vmem>>, vector<4x1xf32>
    %35 = vector.shape_cast %34 : vector<4x1xf32> to vector<1x4x1xf32>
    %c0_16 = arith.constant 0 : index
    %c0_17 = arith.constant 0 : index
    %c0_18 = arith.constant 0 : index
    %36 = vector.load %arg4[%c0_16, %c0_17, %c0_18] : memref<2x4x1xf32, #tpu.memory_space<vmem>>, vector<2x4x1xf32>
    %c0_19 = arith.constant 0 : index
    %c0_20 = arith.constant 0 : index
    %c0_21 = arith.constant 0 : index
    %37 = vector.load %arg5[%c0_19, %c0_20, %c0_21] : memref<2x4x1xf32, #tpu.memory_space<vmem>>, vector<2x4x1xf32>
    %38 = vector.broadcast %33 : vector<1x4x1xf32> to vector<2x4x1xf32>
    %39 = arith.mulf %38, %28 : vector<2x4x1xf32>
    %40 = vector.broadcast %35 : vector<1x4x1xf32> to vector<2x4x1xf32>
    %41 = vector.broadcast %31 : vector<2x1x1xf32> to vector<2x4x1xf32>
    %42 = arith.mulf %40, %41 : vector<2x4x1xf32>
    %43 = arith.addf %39, %42 : vector<2x4x1xf32>
    %44 = arith.mulf %36, %43 : vector<2x4x1xf32>
    %45 = vector.broadcast %33 : vector<1x4x1xf32> to vector<2x4x1xf32>
    %46 = arith.mulf %45, %4 : vector<2x4x1xf32>
    %47 = arith.mulf %46, %28 : vector<2x4x1xf32>
    %48 = vector.broadcast %35 : vector<1x4x1xf32> to vector<2x4x1xf32>
    %49 = vector.broadcast %15 : vector<2x1x1xf32> to vector<2x4x1xf32>
    %50 = arith.mulf %48, %49 : vector<2x4x1xf32>
    %51 = vector.broadcast %31 : vector<2x1x1xf32> to vector<2x4x1xf32>
    %52 = arith.mulf %50, %51 : vector<2x4x1xf32>
    %53 = arith.addf %47, %52 : vector<2x4x1xf32>
    %54 = arith.mulf %36, %53 : vector<2x4x1xf32>
    %55 = arith.subf %37, %54 : vector<2x4x1xf32>
    %56 = vector.broadcast %44 : vector<2x4x1xf32> to vector<2x4x256xf32>
    %57 = arith.mulf %0, %56 : vector<2x4x256xf32>
    %58 = vector.broadcast %55 : vector<2x4x1xf32> to vector<2x4x256xf32>
    %59 = arith.addf %57, %58 : vector<2x4x256xf32>
    %c0_22 = arith.constant 0 : index
    %c0_23 = arith.constant 0 : index
    %c0_24 = arith.constant 0 : index
    %60 = vector.load %arg6[%c0_22, %c0_23, %c0_24] : memref<2x4x256xf32, #tpu.memory_space<vmem>>, vector<2x4x256xf32>
    tpu.vector_store %arg6[%c0_22, %c0_23, %c0_24], %59 {strides = array<i32>} : memref<2x4x256xf32, #tpu.memory_space<vmem>>, vector<2x4x256xf32>,
    return
  }
  func.func @transform_0(%arg0: i32) -> (i32, i32, i32) {
    %c0_i32 = arith.constant 0 : i32
    %c0_i32_0 = arith.constant 0 : i32
    %c0_i32_1 = arith.constant 0 : i32
    return %arg0, %c0_i32, %c0_i32_0 : i32, i32, i32
  }
  func.func @transform_1(%arg0: i32) -> (i32, i32) {
    %c0_i32 = arith.constant 0 : i32
    %c0_i32_0 = arith.constant 0 : i32
    %c0_i32_1 = arith.constant 0 : i32
    return %c0_i32, %c0_i32_0 : i32, i32
  }
  func.func @transform_2(%arg0: i32) -> (i32, i32) {
    %c0_i32 = arith.constant 0 : i32
    %c0_i32_0 = arith.constant 0 : i32
    %c0_i32_1 = arith.constant 0 : i32
    return %c0_i32, %c0_i32_0 : i32, i32
  }
  func.func @transform_3(%arg0: i32) -> (i32, i32, i32) {
    %c0_i32 = arith.constant 0 : i32
    %c0_i32_0 = arith.constant 0 : i32
    %c0_i32_1 = arith.constant 0 : i32
    return %arg0, %c0_i32, %c0_i32_0 : i32, i32, i32
  }
  func.func @transform_4(%arg0: i32) -> (i32, i32, i32) {
    %c0_i32 = arith.constant 0 : i32
    %c0_i32_0 = arith.constant 0 : i32
    %c0_i32_1 = arith.constant 0 : i32
    return %arg0, %c0_i32, %c0_i32_0 : i32, i32, i32
  }
  func.func @transform_5(%arg0: i32) -> (i32, i32, i32) {
    %c0_i32 = arith.constant 0 : i32
    %c0_i32_0 = arith.constant 0 : i32
    %c0_i32_1 = arith.constant 0 : i32
    return %arg0, %c0_i32, %c0_i32_0 : i32, i32, i32
  }
}

</mosaic_0001>

<bundles_post_ra>
// kernel: tpu_custom_call.1
= control target key start
LH: loop header
LB: loop body
LE: loop exit
PB: predicated region body
PF: predicated region fallthrough
CT: control target
= control target key end

     0   :  { %vm29_vm0 = vcmask 1043456   ;;  %s387_s0 = inlined_call_operand.vmem [shape: f32[2,4,256], index: 0, kind: input, shape index: {}]   ;;  %s388_s1 = inlined_call_operand.vmem [shape: f32[4,1], index: 1, kind: input, shape index: {}]   ;;  %s389_s2 = inlined_call_operand.vmem [shape: f32[4,1], index: 2, kind: input, shape index: {}]   ;;  %s390_s3 = inlined_call_operand.vmem [shape: f32[2,4,1], index: 3, kind: input, shape index: {}]   ;;  %s391_s4 = inlined_call_operand.vmem [shape: f32[2,4,1], index: 4, kind: input, shape index: {}]   ;;  %s392_s5 = inlined_call_operand.hbm [shape: f32[2,4,256], index: 5, kind: output, shape index: {}]  }
   0x1   :  { %v308_v0 = vld [vmem:[%s387_s0] sm:$0xff]  ;;  %v313_v1 = vld [vmem:[%s387_s0 + $0x8] sm:$0xff] }
   0x2   :  { %v25_v2 = vcombine.high %v308_v0, %v308_v0  ;;  %v30_v3 = vsel %vm29_vm0, %v308_v0, 0.0  ;;  %v26_v4 = vcombine.high %v313_v1, %v313_v1 }
   0x3   :  { %10 = vsyncpa [#allocation3], 0  ;;  %v35_v6 = vsel %vm29_vm0, %v313_v1, 0.0  ;;  %v270_v10 = vmov 839922192   ;;  %v47_v12 = vlaneseq  ;;  %v271_v34 = vmov 0  }
   0x4   :  { %v31_v5 = vsel %vm29_vm0, %v25_v2, 0.0  ;;  %v36_v7 = vsel %vm29_vm0, %v26_v4, 0.0  ;;  %v45_v11 = vunpack.c.l.s4 %v270_v10  ;;  %234 = vset.pattern.permute.xlu0 %v271_v34  ;;  %235 = vset.pattern.permute.xlu1 %v271_v34  ;;  %v133_v34 = vld [vmem:[%s390_s3] sm:$0xf] }
   0x5   :  { %v32_v8 = vadd.f32 %v31_v5, %v30_v3  ;;  %v37_v9 = vadd.f32 %v36_v7, %v35_v6  ;;  %v48_v14 = vshrl.u32 %v47_v12, 7 }
   0x6   :  { %v46_v13 = vunpack.c.0.s8 %v45_v11 }
   0x7   :  { %33 = vadd.xlane.f32.xlu0 %v32_v8 }
   0x8   :  { %v325_v15 = vsub.s32 %v46_v13, %v48_v14 }
   0xb   :  { %38 = vadd.xlane.f32.xlu0 %v37_v9 }
  0x94   :  { %v34_v16 = vpop.xlane.xlu0 %33 }
  0x95   :  { %v327_v17 = vmul.f32 0.00390625, %v34_v16 }
  0x97   :  { %v50_v18 = vrot.slane %v327_v17, %v325_v15  ;;  %v82_v35 = vsel %vm29_vm0, %v327_v17, 0.0 }
  0x98   :  { %v39_v19 = vpop.xlane.xlu0 %38  ;;  %v83_v36 = vrot.slane %v82_v35, 4 }
  0x99   :  { %v331_v20 = vmul.f32 0.00390625, %v39_v19  ;;  %v60_v21 = vsub.f32 %v308_v0, %v50_v18 }
  0x9a   :  { %v84_v38 = vadd.f32 %v83_v36, %v82_v35 }
  0x9b   :  { %v62_v22 = vmul.f32 %v60_v21, %v60_v21  ;;  %v57_v23 = vrot.slane %v331_v20, %v325_v15  ;;  %v89_v37 = vsel %vm29_vm0, %v331_v20, 0.0 }
  0x9c   :  { %v90_v39 = vrot.slane %v89_v37, 4  ;;  %v85_v41 = vrot.slane %v84_v38, 2 }
  0x9d   :  { %v66_v24 = vcombine.high %v62_v22, %v62_v22  ;;  %v61_v25 = vsub.f32 %v313_v1, %v57_v23  ;;  %v70_v26 = vsel %vm29_vm0, %v62_v22, 0.0 }
  0x9e   :  { %v91_v40 = vadd.f32 %v90_v39, %v89_v37  ;;  %v86_v42 = vadd.f32 %v85_v41, %v84_v38 }
  0x9f   :  { %v71_v27 = vsel %vm29_vm0, %v66_v24, 0.0  ;;  %v63_v28 = vmul.f32 %v61_v25, %v61_v25  ;;  %v132_v24 = vld [vmem:[%s389_s2] sm:$0xf] }
  0xa0   :  { %v72_v29 = vadd.f32 %v71_v27, %v70_v26  ;;  %v92_v43 = vrot.slane %v91_v40, 2  ;;  %v87_v44 = vrot.slane %v86_v42, 1  ;;  %v131_v26 = vld [vmem:[%s388_s1] sm:$0xf] }
  0xa1   :  { %v67_v30 = vcombine.high %v63_v28, %v63_v28  ;;  %v75_v31 = vsel %vm29_vm0, %v63_v28, 0.0  ;;  %v146_v39 = vmul.f32 %v131_v26, %v331_v20 }
  0xa2   :  { %73 = vadd.xlane.f32.xlu1 %v72_v29  ;;  %v93_v45 = vadd.f32 %v92_v43, %v91_v40  ;;  %v88_v46 = vadd.f32 %v87_v44, %v86_v42 }
  0xa3   :  { %v76_v32 = vsel %vm29_vm0, %v67_v30, 0.0  ;;  %v145_v30 = vmul.f32 %v131_v26, %v327_v17 }
  0xa4   :  { %v77_v33 = vadd.f32 %v76_v32, %v75_v31  ;;  %v94_v47 = vrot.slane %v93_v45, 1  ;;  %v97_v48 = vmul.f32 0.25, %v88_v46 }
  0xa6   :  { %78 = vadd.xlane.f32.xlu1 %v77_v33  ;;  %v95_v49 = vadd.f32 %v94_v47, %v93_v45  ;;  %v99_v50 = vsub.f32 %v327_v17, %v97_v48  ;;  %v149_v27 = vmul.f32 %v132_v24, %v97_v48  ;;  %v134_v17 = vld [vmem:[%s390_s3 + $0x4] sm:$0xf]  ;;  %s272_s3 = smov [#allocation2]  }
  0xa7   :  { %s218_s6 = sshll.u32 %s272_s3, 4  ;;  %s219_s6 = int_to_ptr.vmem [resolvable:$true] %s218_s6 }
  0xa8   :  { %v98_v51 = vmul.f32 0.25, %v95_v49  ;;  %v101_v52 = vmul.f32 %v99_v50, %v99_v50  ;;  %v135_v50 = vld [vmem:[%s391_s4] sm:$0xf]  ;;  %p251_p1 = scmp.lt.s32.totalorder %s219_s6, %s219_s6 }
  0xaa   :  { %v100_v53 = vsub.f32 %v331_v20, %v98_v51  ;;  %v103_v54 = vmul.f32 256.0, %v101_v52  ;;  %v150_v35 = vmul.f32 %v132_v24, %v98_v51  ;;  %v136_v52 = vld [vmem:[%s391_s4 + $0x4] sm:$0xf]  ;;  %s246_s4 = scalar_lea.vmem %s219_s6, 256 }
  0xab   :  { %p247_p0 = scmp.ne.s32.totalorder %s219_s6, %s246_s4  ;;  %p252_p2 = scmp.lt.s32.totalorder %s246_s4, %s246_s4 }
  0xac   :  { %v102_v55 = vmul.f32 %v100_v53, %v100_v53 }
  0xad   :  { %p253_p3 = por %p252_p2, %p251_p1 }
  0xae   :  { %v104_v59 = vmul.f32 256.0, %v102_v55 }
  0xaf   :  { %p254_p4 = pnand %p253_p3, %p247_p0 }
 0x12f   :  { %v74_v56 = vpop.xlane.xlu1 %73 }
 0x130   :  { %v105_v57 = vadd.f32 %v103_v54, %v74_v56  ;;  %v80_v5 = vmul.f32 0.003921569, %v74_v56 }
 0x132   :  { %v107_v58 = vsel %vm29_vm0, %v105_v57, 0.0  ;;  %v123_v12 = vadd.f32 1e-05, %v80_v5 }
 0x133   :  { %v108_v60 = vrot.slane %v107_v58, 4  ;;  %v79_v61 = vpop.xlane.xlu1 %78 }
 0x134   :  { %v106_v62 = vadd.f32 %v104_v59, %v79_v61  ;;  %v81_v10 = vmul.f32 0.003921569, %v79_v61  ;;  %238 = vrsqrt.f32 %v123_v12 }
 0x135   :  { %v109_v63 = vadd.f32 %v108_v60, %v107_v58 }
 0x136   :  { %v114_v2 = vsel %vm29_vm0, %v106_v62, 0.0  ;;  %v124_v18 = vadd.f32 1e-05, %v81_v10 }
 0x137   :  { %v110_v3 = vrot.slane %v109_v63, 2  ;;  %v115_v4 = vrot.slane %v114_v2, 4 }
 0x139   :  { %v111_v6 = vadd.f32 %v110_v3, %v109_v63  ;;  %v116_v7 = vadd.f32 %v115_v4, %v114_v2 }
 0x13b   :  { %v112_v8 = vrot.slane %v111_v6, 1  ;;  %v117_v9 = vrot.slane %v116_v7, 2 }
 0x13d   :  { %v113_v11 = vadd.f32 %v112_v8, %v111_v6  ;;  %v118_v13 = vadd.f32 %v117_v9, %v116_v7 }
 0x13e   :  { %v239_v25 = vpop.eup %238 }
 0x13f   :  { %v121_v14 = vmul.f32 0.0009775171, %v113_v11  ;;  %v119_v16 = vrot.slane %v118_v13, 1  ;;  %v137_v31 = vmul.f32 %v239_v25, %v131_v26  ;;  %v147_v37 = vmul.f32 %v239_v25, %v145_v30 }
 0x141   :  { %v127_v19 = vadd.f32 1e-05, %v121_v14  ;;  %v120_v21 = vadd.f32 %v119_v16, %v118_v13 }
 0x143   :  { %240 = vrsqrt.f32 %v127_v19  ;;  %v122_v22 = vmul.f32 0.0009775171, %v120_v21 }
 0x144   :  { %242 = vrsqrt.f32 %v124_v18 }
 0x145   :  { %v128_v23 = vadd.f32 1e-05, %v122_v22 }
 0x147   :  { %244 = vrsqrt.f32 %v128_v23 }
 0x14d   :  { %v241_v28 = vpop.eup %240 }
 0x14e   :  { %v243_v29 = vpop.eup %242  ;;  %v139_v32 = vmul.f32 %v241_v28, %v132_v24  ;;  %v151_v33 = vmul.f32 %v241_v28, %v149_v27 }
 0x14f   :  { %v138_v40 = vmul.f32 %v243_v29, %v131_v26  ;;  %v148_v46 = vmul.f32 %v243_v29, %v146_v39 }
 0x150   :  { %v141_v36 = vadd.f32 %v139_v32, %v137_v31  ;;  %v153_v43 = vadd.f32 %v151_v33, %v147_v37 }
 0x151   :  { %v245_v38 = vpop.eup %244 }
 0x152   :  { %v143_v41 = vmul.f32 %v141_v36, %v133_v34  ;;  %v140_v42 = vmul.f32 %v245_v38, %v132_v24  ;;  %v152_v44 = vmul.f32 %v245_v38, %v150_v35  ;;  %v155_v48 = vmul.f32 %v153_v43, %v133_v34 }
 0x154   :  { %161 = vperm.xlu0 %234, %v143_v41   ;;  %v142_v45 = vadd.f32 %v140_v42, %v138_v40  ;;  %v154_v49 = vadd.f32 %v152_v44, %v148_v46  ;;  %v157_v20 = vsub.f32 %v135_v50, %v155_v48 }
 0x156   :  { %v144_v47 = vmul.f32 %v142_v45, %v134_v17  ;;  %v156_v51 = vmul.f32 %v154_v49, %v134_v17 }
 0x158   :  { %165 = vperm.xlu1 %235, %v144_v47   ;;  %v158_v53 = vsub.f32 %v136_v52, %v156_v51 }
 0x15c   :  { %187 = vperm.xlu1 %235, %v157_v20  }
 0x160   :  { %191 = vperm.xlu1 %235, %v158_v53  }
 0x1d3   :  { %v162_v54 = vpop.permute.xlu0 %161 }
 0x1d4   :  { %v173_v56 = vrot.slane %v162_v54, %v325_v15 }
 0x1d6   :  { %v183_v58 = vmul.f32 %v173_v56, %v308_v0 }
 0x1d7   :  { %v166_v55 = vpop.permute.xlu1 %165 }
 0x1d8   :  { %v180_v59 = vrot.slane %v166_v55, %v325_v15 }
 0x1da   :  { %v184_v63 = vmul.f32 %v180_v59, %v313_v1 }
 0x1db   :  { %v188_v57 = vpop.permute.xlu1 %187 }
 0x1dc   :  { %v199_v60 = vrot.slane %v188_v57, %v325_v15 }
 0x1de   :  { %v209_v61 = vadd.f32 %v199_v60, %v183_v58 }
 0x1df   :  { %v192_v62 = vpop.permute.xlu1 %191 }
 0x1e0   :  { %211 = vst [vmem:[#allocation2] sm:$0xff] %v209_v61  ;;  %v206_v2 = vrot.slane %v192_v62, %v325_v15 }
 0x1e2   :  { %v210_v3 = vadd.f32 %v206_v2, %v184_v63 }
 0x1e4   :  { %212 = vst [vmem:[#allocation2 + $0x8] sm:$0xff] %v210_v3 }
 0x1e5   :  { %257 = shalt.err (!%p254_p4)
}
 0x1e6   :  { %s258_s9 = scalar_lea.hbm %s392_s5, 256 }
 0x1e7   :  { %p259_p5 = scmp.ne.s32.totalorder %s392_s5, %s258_s9  ;;  %p262_p6 = scmp.lt.u32.totalorder %s258_s9, %s392_s5 }
 0x1e9   :  { %p264_p7 = pnand %p262_p6, %p259_p5 }
 0x1eb   :  { %267 = shalt.err (!%p264_p7)
}
 0x1ec   :  { %s273_s14 = smov 128   ;;  %s274_s15 = smov 8  }
 0x1ed   :  { %224 = dma.vmem_to_hbm [thread:$0]  %s219_s6, 256, %s392_s5, [#allocation3], %s273_s14, %s273_s14, %s274_s15  }
 0x1ee   :  { %268 = dma.done.wait [#allocation3], 256  }
 0x1ef   :  { %269 = vsyncadd [#allocation3], 4294967040 }
 0x1f0   :  { %228 = vsyncpa [#allocation3], 1 }

</bundles_post_ra>
